<compile_context>
chip_gen: v7x
topology: tpu7x:2x2x1
jax: 0.10.0
libtpu: 0.0.40
codegen_flags: <defaults>
</compile_context>

<pallas_src>
import functools

import jax
import jax.numpy as jnp
from jax.experimental import pallas as pl
from jax.experimental.pallas import tpu as pltpu

_SUBLANES = 8
_LANES = 128


def _round_up(x: int, m: int) -> int:
    return ((x + m - 1) // m) * m


def _pick_lane_tile(num_walkers: int) -> int:
    # Fatter walker tiles amortize the ~0.35us per-grid-step overhead, but we
    # keep >= 2 programs whenever possible so v7x's two TensorCores both get
    # work from the "parallel" grid axis.
    if num_walkers >= 1024:
        return 512
    if num_walkers >= 512:
        return 256
    return 128


def _random_walk_kernel(nodetab_ref, coltab_ref, start_ref, u_ref, nid_ref,
                        *, walk_length: int):
    """One lane-tile of walkers, full walk unrolled.

    nodetab_ref: VMEM (8, Np_pad) f32   row 0 = CSR rowptr, row 1 = out-degree
    coltab_ref:  VMEM (8, Ep_pad) f32   row 0 = CSR column indices (row-sorted)
    start_ref:   VMEM (1, Wt)     int32 walker root nodes (lane-major)
    u_ref:       VMEM (Lu, Wt)    f32   uniforms in [0, 1), one row per step
    nid_ref:     VMEM (Lo, Wt)    int32 output walk node ids (lane-major)
    """
    Np = nodetab_ref.shape[1]
    Ep = coltab_ref.shape[1]
    Wt = start_ref.shape[1]
    Lo = nid_ref.shape[0]

    # Hoisted loop-invariant iotas; tables loaded once (resident across
    # walker tiles thanks to the constant index_map).
    node_iota = jax.lax.broadcasted_iota(jnp.int32, (Np, Wt), 0)
    edge_iota = jax.lax.broadcasted_iota(jnp.int32, (Ep, Wt), 0)
    node_tab = nodetab_ref[...]            # (8, Np) f32
    col_tab = coltab_ref[...]              # (8, Ep) f32

    cur = start_ref[...]                   # (1, Wt) int32
    rows = [cur]

    # walk_length is tiny and static -> unrolled python loop.
    for step in range(walk_length):
        # Node gather via ONE one-hot MXU matmul: fetches rowptr[cur] and
        # deg[cur] together (shared mask, reduction done on the MXU).
        node_oh = (node_iota == cur).astype(jnp.float32)            # (Np, Wt)
        pd = jnp.dot(node_tab, node_oh,
                     preferred_element_type=jnp.float32)            # (8, Wt)
        p0f = pd[0:1, :]                                            # rowptr[cur]
        degf = pd[1:2, :]                                           # deg[cur]

        # Uniform neighbour offset in [0, deg).  Exact for values < 2^24.
        u = u_ref[step:step + 1, :]                                 # (1, Wt)
        off = jnp.floor(u * degf)
        off = jnp.minimum(off, jnp.maximum(degf - 1.0, 0.0))
        eidx = (p0f + off).astype(jnp.int32)                        # (1, Wt)

        # Edge gather via one-hot MXU matmul: col[rowptr[cur] + off].
        edge_oh = (edge_iota == eidx).astype(jnp.float32)           # (Ep, Wt)
        nxt = jnp.dot(col_tab, edge_oh,
                      preferred_element_type=jnp.float32)[0:1, :]
        nxt = nxt.astype(jnp.int32)

        # Zero out-degree => stay at current node (torch_cluster semantics).
        cur = jnp.where(degf > 0.0, nxt, cur)
        rows.append(cur)

    # Pad to a full (8k, 128)-aligned block and store once (unmasked vst).
    walk = jnp.concatenate(rows, axis=0)                            # (L+1, Wt)
    if Lo > walk_length + 1:
        walk = jnp.concatenate(
            [walk, jnp.zeros((Lo - walk_length - 1, Wt), jnp.int32)], axis=0)
    nid_ref[...] = walk


def _random_walk_pallas(nodetab, coltab, start_row, u_rows,
                        walk_length: int, lane_tile: int):
    W_pad = start_row.shape[1]
    Lu = u_rows.shape[0]
    Lo = _round_up(walk_length + 1, _SUBLANES)
    grid = (W_pad // lane_tile,)

    # Explicit scoped-VMEM budget: double-buffered tables + walker blocks
    # + headroom, clamped to v7x's 64 MiB physical VMEM.
    table_bytes = 4 * (int(nodetab.size) + int(coltab.size))
    block_bytes = 4 * lane_tile * (1 + Lu + Lo)
    vmem_bytes = int(2 * (table_bytes + block_bytes) + (8 << 20))
    vmem_bytes = min(max(vmem_bytes, 16 << 20), 64 << 20)

    kernel = functools.partial(_random_walk_kernel, walk_length=walk_length)
    return pl.pallas_call(
        kernel,
        out_shape=jax.ShapeDtypeStruct((Lo, W_pad), jnp.int32),
        grid_spec=pltpu.PrefetchScalarGridSpec(
            num_scalar_prefetch=0,
            grid=grid,
            in_specs=[
                # Lane-dense CSR tables: full-array blocks with a constant
                # index_map => DMA'd once and resident across walker tiles.
                # TODO(synk): on v7x, single-buffer these resident tables
                #   (pipeline_mode=pl.Buffered(1)) to halve their VMEM cost.
                # TODO(synk): for graphs whose tables exceed VMEM, stream
                #   lane-dense (K,128) edge blocks from pl.ANY/HBM with
                #   make_async_copy double-buffering (accumulating the edge
                #   one-hot matmul per block), and use an SMEM scalar gather
                #   for rowptr/deg when N is large.
                pl.BlockSpec(nodetab.shape, lambda i: (0, 0)),
                pl.BlockSpec(coltab.shape, lambda i: (0, 0)),
                pl.BlockSpec((1, lane_tile), lambda i: (0, i)),
                pl.BlockSpec((Lu, lane_tile), lambda i: (0, i)),
            ],
            out_specs=pl.BlockSpec((Lo, lane_tile), lambda i: (0, i)),
        ),
        compiler_params=pltpu.CompilerParams(
            dimension_semantics=("parallel",),
            vmem_limit_bytes=vmem_bytes),
    )(nodetab, coltab, start_row, u_rows)


def random_walk(edge_index, *, start, walk_length, num_nodes,
                is_sorted=False, seed=0):
    """Uniform random walks.  Returns n_id of shape (W, walk_length + 1)."""
    edge_index = edge_index.astype(jnp.int32)
    row, col = edge_index[0], edge_index[1]
    E = int(row.shape[0])

    # f32 one-hot gathers are exact only for indices < 2^24.
    if num_nodes >= (1 << 24) or E >= (1 << 24):
        raise ValueError("random_walk: num_nodes and num_edges must be < 2^24")

    # --- build CSR tables (glue, plain JAX) ---
    if is_sorted:
        # Trusted contract (same as torch_cluster): edge_index must actually
        # be row-sorted or the walks are silently wrong.
        row_s, col_s = row, col
    else:
        order = jnp.argsort(row, stable=True)
        row_s, col_s = row[order], col[order]
    counts = jnp.zeros((num_nodes,), jnp.int32).at[row_s].add(1)
    ptr_start = (jnp.cumsum(counts) - counts).astype(jnp.int32)   # rowptr[v]
    deg = counts                                                  # out-degree

    Np_pad = _round_up(max(num_nodes, 1), _LANES)
    Ep_pad = _round_up(max(E, 1), _LANES)

    # Lane-dense tables, f32 (integer-exact < 2^24), sublane-padded to 8 rows.
    nodetab = jnp.zeros((_SUBLANES, Np_pad), jnp.float32)
    nodetab = nodetab.at[0, :num_nodes].set(ptr_start.astype(jnp.float32))
    nodetab = nodetab.at[1, :num_nodes].set(deg.astype(jnp.float32))
    coltab = jnp.zeros((_SUBLANES, Ep_pad), jnp.float32)
    coltab = coltab.at[0, :E].set(col_s.astype(jnp.float32))

    # --- walker roots, lane-major ---
    start = start.astype(jnp.int32)
    W = int(start.shape[0])
    lane_tile = _pick_lane_tile(W)
    W_pad = _round_up(max(W, 1), lane_tile)
    start_row = jnp.zeros((1, W_pad), jnp.int32).at[0, :W].set(start)

    # --- pre-drawn uniforms, (8k, 128)-padded so loads are unmasked ---
    Lu_pad = _round_up(max(walk_length, 1), _SUBLANES)
    u_rows = jax.random.uniform(jax.random.PRNGKey(seed),
                                (Lu_pad, W_pad), jnp.float32)

    nid = _random_walk_pallas(nodetab, coltab, start_row, u_rows,
                              walk_length, lane_tile)      # (Lo, W_pad)
    return nid[:walk_length + 1, :W].T                     # (W, L+1)


def add_random_walk_edge(edge_index,
                         edge_weight=None,
                         *,
                         start=None,
                         walks_per_node: int = 1,
                         walk_length: int = 3,
                         num_nodes=None,
                         skip_first: bool = True,
                         is_sorted: bool = False,
                         training: bool = True,
                         seed: int = 0):
    """JAX/Pallas equivalent of mooon.add_random_walk_edge."""
    edge_index = edge_index.astype(jnp.int32)
    if (not training) or walk_length <= 0:
        return edge_index, edge_weight

    if num_nodes is None:
        # NOTE: forces a host sync; prefer passing num_nodes explicitly.
        num_nodes = int(jnp.max(edge_index)) + 1

    if start is None:
        start = jnp.arange(num_nodes, dtype=jnp.int32)
    start = jnp.tile(start.astype(jnp.int32), walks_per_node)

    n_id = random_walk(edge_index, start=start, walk_length=walk_length,
                       num_nodes=num_nodes, is_sorted=is_sorted, seed=seed)

    # --- build new edges: root -> sampled nodes ---
    first = 2 if skip_first else 1
    sampled = n_id[:, first:]                       # (W, L_add)
    L_add = sampled.shape[1]
    new_row = jnp.repeat(start, L_add)
    new_col = sampled.reshape(-1)
    new_edges = jnp.stack([new_row, new_col], axis=0).astype(jnp.int32)

    out_edge_index = jnp.concatenate([edge_index, new_edges], axis=1)
    out_edge_weight = None
    if edge_weight is not None:
        ones = jnp.ones((new_row.shape[0],), edge_weight.dtype)
        out_edge_weight = jnp.concatenate([edge_weight, ones])
    return out_edge_index, out_edge_weight


class AddRandomWalkEdge:
    """JAX port of mooon.layers.AddRandomWalkEdge."""

    def __init__(self, start=None, walks_per_node=1, walk_length=3,
                 skip_first=True, num_nodes=None, is_sorted=False):
        if start is not None and start.dtype == jnp.bool_:
            start = jnp.nonzero(start)[0]
        self.start = start
        self.walks_per_node = walks_per_node
        self.walk_length = walk_length
        self.num_nodes = num_nodes
        self.is_sorted = is_sorted
        self.skip_first = skip_first
        self.training = True

    def __call__(self, edge_index, edge_weight=None, *, seed=0):
        return add_random_walk_edge(
            edge_index, edge_weight,
            start=self.start,
            walks_per_node=self.walks_per_node,
            walk_length=self.walk_length,
            num_nodes=self.num_nodes,
            skip_first=self.skip_first,
            is_sorted=self.is_sorted,
            training=self.training,
            seed=seed)


if __name__ == "__main__":
    key = jax.random.PRNGKey(0)
    k_src, k_dst, k_w = jax.random.split(key, 3)

    NUM_NODES = 16
    NUM_EDGES = 32
    WALK_LENGTH = 3
    src = jax.random.randint(k_src, (NUM_EDGES,), 0, NUM_NODES, jnp.int32)
    dst = jax.random.randint(k_dst, (NUM_EDGES,), 0, NUM_NODES, jnp.int32)
    edge_index = jnp.stack([src, dst], axis=0)              # (2, 32)
    edge_weight = jax.random.uniform(k_w, (NUM_EDGES,), jnp.float32)

    layer = AddRandomWalkEdge(walks_per_node=1, walk_length=WALK_LENGTH,
                              skip_first=True, num_nodes=NUM_NODES)
    out_edge_index, out_edge_weight = layer(edge_index, edge_weight, seed=0)
    jax.block_until_ready(out_edge_index)
    jax.block_until_ready(out_edge_weight)

    # --- sanity checks on shapes ---
    W = NUM_NODES * 1
    L_add = WALK_LENGTH - 1          # skip_first drops the first hop
    assert out_edge_index.shape == (2, NUM_EDGES + W * L_add)
    assert out_edge_weight.shape == (NUM_EDGES + W * L_add,)
    assert bool(jnp.all(out_edge_index >= 0))
    assert bool(jnp.all(out_edge_index < NUM_NODES))
    assert bool(jnp.all(out_edge_weight[NUM_EDGES:] == 1.0))

    # --- semantic check: every hop of the walk is a real out-edge (or a
    #     stay-in-place on zero out-degree) ---
    n_id = random_walk(edge_index, start=jnp.arange(NUM_NODES, dtype=jnp.int32),
                       walk_length=WALK_LENGTH, num_nodes=NUM_NODES, seed=0)
    assert n_id.shape == (NUM_NODES, WALK_LENGTH + 1)
    assert bool(jnp.all(n_id[:, 0] == jnp.arange(NUM_NODES)))
    adj = jnp.zeros((NUM_NODES, NUM_NODES), bool).at[src, dst].set(True)
    deg = jnp.zeros((NUM_NODES,), jnp.int32).at[src].add(1)
    prev, nxt = n_id[:, :-1], n_id[:, 1:]
    valid_hop = adj[prev, nxt]
    stayed = (deg[prev] == 0) & (nxt == prev)
    assert bool(jnp.all(valid_hop | stayed))

    print("KERNEL_OK")
</pallas_src>

<mosaic_0001>
module attributes {stable_mosaic.version = 11 : i64} {
  func.func @_random_walk_kernel(%arg0: i32, %arg1: memref<8x128xf32, #tpu.memory_space<vmem>>, %arg2: memref<8x128xf32, #tpu.memory_space<vmem>>, %arg3: memref<1x128xi32, #tpu.memory_space<vmem>>, %arg4: memref<8x128xf32, #tpu.memory_space<vmem>>, %arg5: memref<8x128xi32, #tpu.memory_space<vmem>>) attributes {dimension_semantics = [#tpu.dimension_semantics<parallel>], iteration_bounds = array<i64: 1>, scalar_prefetch = 0 : i64, scratch_operands = 0 : i64, tpu.core_type = #tpu.core_type<tc>, window_params = [{pipeline_mode = #tpu.pipeline_mode<synchronous>, transform_indices = @transform_0, window_bounds = array<i64: 8, 128>}, {pipeline_mode = #tpu.pipeline_mode<synchronous>, transform_indices = @transform_1, window_bounds = array<i64: 8, 128>}, {transform_indices = @transform_2, window_bounds = array<i64: 1, 128>}, {transform_indices = @transform_3, window_bounds = array<i64: 8, 128>}, {transform_indices = @transform_4, window_bounds = array<i64: 8, 128>}]} {
    %0 = tpu.iota {dimensions = array<i32: 0>} : vector<128x128xi32>
    %1 = tpu.iota {dimensions = array<i32: 0>} : vector<128x128xi32>
    %c0 = arith.constant 0 : index
    %c0_0 = arith.constant 0 : index
    %2 = vector.load %arg1[%c0, %c0_0] : memref<8x128xf32, #tpu.memory_space<vmem>>, vector<8x128xf32>
    %c0_1 = arith.constant 0 : index
    %c0_2 = arith.constant 0 : index
    %3 = vector.load %arg2[%c0_1, %c0_2] : memref<8x128xf32, #tpu.memory_space<vmem>>, vector<8x128xf32>
    %c0_3 = arith.constant 0 : index
    %c0_4 = arith.constant 0 : index
    %4 = vector.load %arg3[%c0_3, %c0_4] : memref<1x128xi32, #tpu.memory_space<vmem>>, vector<1x128xi32>
    %5 = vector.broadcast %4 : vector<1x128xi32> to vector<128x128xi32>
    %6 = arith.cmpi eq, %0, %5 : vector<128x128xi32>
    %7 = arith.extui %6 : vector<128x128xi1> to vector<128x128xi32>
    %8 = arith.sitofp %7 : vector<128x128xi32> to vector<128x128xf32>
    %cst = arith.constant dense<0.000000e+00> : vector<8x128xf32>
    %9 = tpu.matmul %2, %8, %cst {dimension_numbers = #tpu.dot_dimension_numbers<[1], [0], [0], [1], [0, 0, 1, 1], [], []>} : vector<8x128xf32>, vector<128x128xf32>, vector<8x128xf32> -> vector<8x128xf32>
    %10 = vector.extract_strided_slice %9 {offsets = [0, 0], sizes = [1, 128], strides = [1, 1]} : vector<8x128xf32> to vector<1x128xf32>
    %11 = vector.extract_strided_slice %9 {offsets = [1, 0], sizes = [1, 128], strides = [1, 1]} : vector<8x128xf32> to vector<1x128xf32>
    %c0_5 = arith.constant 0 : index
    %c0_6 = arith.constant 0 : index
    %12 = vector.load %arg4[%c0_5, %c0_6] : memref<8x128xf32, #tpu.memory_space<vmem>>, vector<1x128xf32>
    %13 = arith.mulf %12, %11 : vector<1x128xf32>
    %14 = math.floor %13 : vector<1x128xf32>
    %cst_7 = arith.constant 1.000000e+00 : f32
    %15 = vector.broadcast %cst_7 : f32 to vector<1x128xf32>
    %16 = arith.subf %11, %15 : vector<1x128xf32>
    %cst_8 = arith.constant 0.000000e+00 : f32
    %17 = vector.broadcast %cst_8 : f32 to vector<1x128xf32>
    %18 = arith.maximumf %16, %17 : vector<1x128xf32>
    %19 = arith.minimumf %14, %18 : vector<1x128xf32>
    %20 = arith.addf %10, %19 : vector<1x128xf32>
    %21 = arith.fptosi %20 : vector<1x128xf32> to vector<1x128xi32>
    %22 = vector.broadcast %21 : vector<1x128xi32> to vector<128x128xi32>
    %23 = arith.cmpi eq, %1, %22 : vector<128x128xi32>
    %24 = arith.extui %23 : vector<128x128xi1> to vector<128x128xi32>
    %25 = arith.sitofp %24 : vector<128x128xi32> to vector<128x128xf32>
    %cst_9 = arith.constant dense<0.000000e+00> : vector<8x128xf32>
    %26 = tpu.matmul %3, %25, %cst_9 {dimension_numbers = #tpu.dot_dimension_numbers<[1], [0], [0], [1], [0, 0, 1, 1], [], []>} : vector<8x128xf32>, vector<128x128xf32>, vector<8x128xf32> -> vector<8x128xf32>
    %27 = vector.extract_strided_slice %26 {offsets = [0, 0], sizes = [1, 128], strides = [1, 1]} : vector<8x128xf32> to vector<1x128xf32>
    %28 = arith.fptosi %27 : vector<1x128xf32> to vector<1x128xi32>
    %cst_10 = arith.constant 0.000000e+00 : f32
    %29 = vector.broadcast %cst_10 : f32 to vector<1x128xf32>
    %30 = arith.cmpf ogt, %11, %29 : vector<1x128xf32>
    %31 = arith.select %30, %28, %4 : vector<1x128xi1>, vector<1x128xi32>
    %32 = vector.broadcast %31 : vector<1x128xi32> to vector<128x128xi32>
    %33 = arith.cmpi eq, %0, %32 : vector<128x128xi32>
    %34 = arith.extui %33 : vector<128x128xi1> to vector<128x128xi32>
    %35 = arith.sitofp %34 : vector<128x128xi32> to vector<128x128xf32>
    %cst_11 = arith.constant dense<0.000000e+00> : vector<8x128xf32>
    %36 = tpu.matmul %2, %35, %cst_11 {dimension_numbers = #tpu.dot_dimension_numbers<[1], [0], [0], [1], [0, 0, 1, 1], [], []>} : vector<8x128xf32>, vector<128x128xf32>, vector<8x128xf32> -> vector<8x128xf32>
    %37 = vector.extract_strided_slice %36 {offsets = [0, 0], sizes = [1, 128], strides = [1, 1]} : vector<8x128xf32> to vector<1x128xf32>
    %38 = vector.extract_strided_slice %36 {offsets = [1, 0], sizes = [1, 128], strides = [1, 1]} : vector<8x128xf32> to vector<1x128xf32>
    %c1 = arith.constant 1 : index
    %c0_12 = arith.constant 0 : index
    %39 = vector.load %arg4[%c1, %c0_12] : memref<8x128xf32, #tpu.memory_space<vmem>>, vector<1x128xf32>
    %40 = arith.mulf %39, %38 : vector<1x128xf32>
    %41 = math.floor %40 : vector<1x128xf32>
    %cst_13 = arith.constant 1.000000e+00 : f32
    %42 = vector.broadcast %cst_13 : f32 to vector<1x128xf32>
    %43 = arith.subf %38, %42 : vector<1x128xf32>
    %cst_14 = arith.constant 0.000000e+00 : f32
    %44 = vector.broadcast %cst_14 : f32 to vector<1x128xf32>
    %45 = arith.maximumf %43, %44 : vector<1x128xf32>
    %46 = arith.minimumf %41, %45 : vector<1x128xf32>
    %47 = arith.addf %37, %46 : vector<1x128xf32>
    %48 = arith.fptosi %47 : vector<1x128xf32> to vector<1x128xi32>
    %49 = vector.broadcast %48 : vector<1x128xi32> to vector<128x128xi32>
    %50 = arith.cmpi eq, %1, %49 : vector<128x128xi32>
    %51 = arith.extui %50 : vector<128x128xi1> to vector<128x128xi32>
    %52 = arith.sitofp %51 : vector<128x128xi32> to vector<128x128xf32>
    %cst_15 = arith.constant dense<0.000000e+00> : vector<8x128xf32>
    %53 = tpu.matmul %3, %52, %cst_15 {dimension_numbers = #tpu.dot_dimension_numbers<[1], [0], [0], [1], [0, 0, 1, 1], [], []>} : vector<8x128xf32>, vector<128x128xf32>, vector<8x128xf32> -> vector<8x128xf32>
    %54 = vector.extract_strided_slice %53 {offsets = [0, 0], sizes = [1, 128], strides = [1, 1]} : vector<8x128xf32> to vector<1x128xf32>
    %55 = arith.fptosi %54 : vector<1x128xf32> to vector<1x128xi32>
    %cst_16 = arith.constant 0.000000e+00 : f32
    %56 = vector.broadcast %cst_16 : f32 to vector<1x128xf32>
    %57 = arith.cmpf ogt, %38, %56 : vector<1x128xf32>
    %58 = arith.select %57, %55, %31 : vector<1x128xi1>, vector<1x128xi32>
    %59 = vector.broadcast %58 : vector<1x128xi32> to vector<128x128xi32>
    %60 = arith.cmpi eq, %0, %59 : vector<128x128xi32>
    %61 = arith.extui %60 : vector<128x128xi1> to vector<128x128xi32>
    %62 = arith.sitofp %61 : vector<128x128xi32> to vector<128x128xf32>
    %cst_17 = arith.constant dense<0.000000e+00> : vector<8x128xf32>
    %63 = tpu.matmul %2, %62, %cst_17 {dimension_numbers = #tpu.dot_dimension_numbers<[1], [0], [0], [1], [0, 0, 1, 1], [], []>} : vector<8x128xf32>, vector<128x128xf32>, vector<8x128xf32> -> vector<8x128xf32>
    %64 = vector.extract_strided_slice %63 {offsets = [0, 0], sizes = [1, 128], strides = [1, 1]} : vector<8x128xf32> to vector<1x128xf32>
    %65 = vector.extract_strided_slice %63 {offsets = [1, 0], sizes = [1, 128], strides = [1, 1]} : vector<8x128xf32> to vector<1x128xf32>
    %c2 = arith.constant 2 : index
    %c0_18 = arith.constant 0 : index
    %66 = vector.load %arg4[%c2, %c0_18] : memref<8x128xf32, #tpu.memory_space<vmem>>, vector<1x128xf32>
    %67 = arith.mulf %66, %65 : vector<1x128xf32>
    %68 = math.floor %67 : vector<1x128xf32>
    %cst_19 = arith.constant 1.000000e+00 : f32
    %69 = vector.broadcast %cst_19 : f32 to vector<1x128xf32>
    %70 = arith.subf %65, %69 : vector<1x128xf32>
    %cst_20 = arith.constant 0.000000e+00 : f32
    %71 = vector.broadcast %cst_20 : f32 to vector<1x128xf32>
    %72 = arith.maximumf %70, %71 : vector<1x128xf32>
    %73 = arith.minimumf %68, %72 : vector<1x128xf32>
    %74 = arith.addf %64, %73 : vector<1x128xf32>
    %75 = arith.fptosi %74 : vector<1x128xf32> to vector<1x128xi32>
    %76 = vector.broadcast %75 : vector<1x128xi32> to vector<128x128xi32>
    %77 = arith.cmpi eq, %1, %76 : vector<128x128xi32>
    %78 = arith.extui %77 : vector<128x128xi1> to vector<128x128xi32>
    %79 = arith.sitofp %78 : vector<128x128xi32> to vector<128x128xf32>
    %cst_21 = arith.constant dense<0.000000e+00> : vector<8x128xf32>
    %80 = tpu.matmul %3, %79, %cst_21 {dimension_numbers = #tpu.dot_dimension_numbers<[1], [0], [0], [1], [0, 0, 1, 1], [], []>} : vector<8x128xf32>, vector<128x128xf32>, vector<8x128xf32> -> vector<8x128xf32>
    %81 = vector.extract_strided_slice %80 {offsets = [0, 0], sizes = [1, 128], strides = [1, 1]} : vector<8x128xf32> to vector<1x128xf32>
    %82 = arith.fptosi %81 : vector<1x128xf32> to vector<1x128xi32>
    %cst_22 = arith.constant 0.000000e+00 : f32
    %83 = vector.broadcast %cst_22 : f32 to vector<1x128xf32>
    %84 = arith.cmpf ogt, %65, %83 : vector<1x128xf32>
    %85 = arith.select %84, %82, %58 : vector<1x128xi1>, vector<1x128xi32>
    %86 = tpu.concatenate %4, %31, %58, %85 in 0 : vector<1x128xi32>, vector<1x128xi32>, vector<1x128xi32>, vector<1x128xi32> -> vector<4x128xi32>
    %c0_i32 = arith.constant 0 : i32
    %87 = vector.broadcast %c0_i32 : i32 to vector<4x128xi32>
    %88 = tpu.concatenate %86, %87 in 0 : vector<4x128xi32>, vector<4x128xi32> -> vector<8x128xi32>
    %c0_23 = arith.constant 0 : index
    %c0_24 = arith.constant 0 : index
    %89 = vector.load %arg5[%c0_23, %c0_24] : memref<8x128xi32, #tpu.memory_space<vmem>>, vector<8x128xi32>
    tpu.vector_store %arg5[%c0_23, %c0_24], %88 {strides = array<i32>} : memref<8x128xi32, #tpu.memory_space<vmem>>, vector<8x128xi32>,
    return
  }
  func.func @transform_0(%arg0: i32) -> (i32, i32) {
    %c0_i32 = arith.constant 0 : i32
    %c0_i32_0 = arith.constant 0 : i32
    %c0_i32_1 = arith.constant 0 : i32
    return %c0_i32, %c0_i32_0 : i32, i32
  }
  func.func @transform_1(%arg0: i32) -> (i32, i32) {
    %c0_i32 = arith.constant 0 : i32
    %c0_i32_0 = arith.constant 0 : i32
    %c0_i32_1 = arith.constant 0 : i32
    return %c0_i32, %c0_i32_0 : i32, i32
  }
  func.func @transform_2(%arg0: i32) -> (i32, i32) {
    %c0_i32 = arith.constant 0 : i32
    %c0_i32_0 = arith.constant 0 : i32
    return %c0_i32, %arg0 : i32, i32
  }
  func.func @transform_3(%arg0: i32) -> (i32, i32) {
    %c0_i32 = arith.constant 0 : i32
    %c0_i32_0 = arith.constant 0 : i32
    return %c0_i32, %arg0 : i32, i32
  }
  func.func @transform_4(%arg0: i32) -> (i32, i32) {
    %c0_i32 = arith.constant 0 : i32
    %c0_i32_0 = arith.constant 0 : i32
    return %c0_i32, %arg0 : i32, i32
  }
}

</mosaic_0001>

<bundles_post_ra>
// kernel: tpu_custom_call.1
= control target key start
LH: loop header
LB: loop body
LE: loop exit
PB: predicated region body
PF: predicated region fallthrough
CT: control target
= control target key end

     0   :  { %9 = vsyncpa [#allocation3], 0  ;;  %s2021_s0 = inlined_call_operand.hbm [shape: f32[8,128], index: 0, kind: input, shape index: {}]   ;;  %s2022_s1 = inlined_call_operand.hbm [shape: f32[8,128], index: 1, kind: input, shape index: {}]   ;;  %s2023_s2 = inlined_call_operand.vmem [shape: s32[1,128], index: 2, kind: input, shape index: {}]   ;;  %s2024_s3 = inlined_call_operand.vmem [shape: f32[8,128], index: 3, kind: input, shape index: {}]   ;;  %s2025_s4 = inlined_call_operand.hbm [shape: s32[8,128], index: 4, kind: output, shape index: {}]  }
   0x1   :  { %10 = vsyncpa [#allocation6], 0 }
   0x2   :  { %11 = vsyncpa [#allocation4], 0  ;;  %s1617_s15 = smov [#allocation2]   ;;  %s1618_s17 = smov [#allocation5]  }
   0x3   :  { %s18_s16 = sshll.u32 %s1617_s15, 4  ;;  %s28_s18 = sshll.u32 %s1618_s17, 4  ;;  %s19_s16 = int_to_ptr.vmem [resolvable:$true] %s18_s16  ;;  %s29_s18 = int_to_ptr.vmem [resolvable:$true] %s28_s18 }
   0x4   :  { %s1545_s21 = scalar_lea.hbm %s2021_s0, 128 }
   0x5   :  { %p1546_p0 = scmp.ne.s32.totalorder %s2021_s0, %s1545_s21  ;;  %p1549_p1 = scmp.lt.u32.totalorder %s1545_s21, %s2021_s0 }
   0x7   :  { %p1551_p2 = pnand %p1549_p1, %p1546_p0 }
   0x9   :  { %1554 = shalt.err (!%p1551_p2)
}
   0xa   :  { %s1555_s26 = scalar_lea.vmem %s19_s16, 128  ;;  %p1560_p4 = scmp.lt.s32.totalorder %s19_s16, %s19_s16 }
   0xb   :  { %p1556_p3 = scmp.ne.s32.totalorder %s19_s16, %s1555_s26  ;;  %p1561_p5 = scmp.lt.s32.totalorder %s1555_s26, %s1555_s26 }
   0xd   :  { %p1562_p6 = por %p1561_p5, %p1560_p4 }
   0xf   :  { %p1563_p7 = pnand %p1562_p6, %p1556_p3 }
  0x11   :  { %1566 = shalt.err (!%p1563_p7)
}
  0x12   :  { %21 = dma.hbm_to_vmem [thread:$0]  %s2021_s0, 128, %s19_s16, [#allocation3]  }
  0x13   :  { %s1567_s5 = scalar_lea.hbm %s2022_s1, 128 }
  0x14   :  { %p1568_p8 = scmp.ne.s32.totalorder %s2022_s1, %s1567_s5  ;;  %p1571_p9 = scmp.lt.u32.totalorder %s1567_s5, %s2022_s1 }
  0x16   :  { %p1573_p10 = pnand %p1571_p9, %p1568_p8 }
  0x18   :  { %1576 = shalt.err (!%p1573_p10)
}
  0x19   :  { %s1577_s10 = scalar_lea.vmem %s29_s18, 128  ;;  %p1582_p12 = scmp.lt.s32.totalorder %s29_s18, %s29_s18 }
  0x1a   :  { %p1578_p11 = scmp.ne.s32.totalorder %s29_s18, %s1577_s10  ;;  %p1583_p13 = scmp.lt.s32.totalorder %s1577_s10, %s1577_s10 }
  0x1c   :  { %p1584_p0 = por %p1583_p13, %p1582_p12 }
  0x1e   :  { %p1585_p1 = pnand %p1584_p0, %p1578_p11 }
  0x20   :  { %1588 = shalt.err (!%p1585_p1)
}
  0x21   :  { %31 = dma.hbm_to_vmem [thread:$0]  %s2022_s1, 128, %s29_s18, [#allocation6]  }
  0x22   :  { %1611 = dma.done.wait [#allocation3], 128  }
  0x23   :  { %1612 = vsyncadd [#allocation3], 4294967168 }
  0x24   :  { %1613 = dma.done.wait [#allocation6], 128  }
  0x25   :  { %1614 = vsyncadd [#allocation6], 4294967168  ;;  %v42_v0 = vlaneseq  ;;  %v1619_v1 = vmov 0.0|0.0   ;;  %vm1620_vm0 = vmmov 0   ;;  %v1621_v3 = vmov 0.0   ;;  %v1785_v23 = vld [vmem:[#allocation2] sm:$0xff] }
  0x26   :  { %1382 = vmatprep.subr.bf16.mxu0 %v1619_v1  ;;  %1406 = vmatprep.subr.bf16.mxu1 %v1619_v1  ;;  %v1696_v8 = vld [vmem:[%s2023_s2] sm:$0x1]  ;;  %v1622_v12 = vmov 1.0|1.0   ;;  %v1831_v38 = vld [vmem:[#allocation5] sm:$0xff] }
  0x27   :  { %v1675_v2 = vshrl.u32 %v42_v0, 7  ;;  %1204 = vmatprep.mubr.msk.f32.mxu0 %vm1620_vm0, %v1621_v3  ;;  %1239 = vmatprep.mubr.msk.f32.mxu1 %vm1620_vm0, %v1621_v3  ;;  %v184_v25 = vld [vmem:[%s2024_s3] sm:$0x1]  ;;  %v446_v48 = vld [vmem:[%s2024_s3 + $0x1] sm:$0x1] }
  0x29   :  { %v1682_v4 = vsub.s32 0, %v1675_v2  ;;  %v1685_v5 = vadd.s32 8, %v1675_v2  ;;  %v1688_v6 = vadd.s32 16, %v1675_v2  ;;  %v1691_v7 = vadd.s32 24, %v1675_v2 }
  0x2a   :  { %v1703_v10 = vadd.s32 32, %v1675_v2  ;;  %v1706_v11 = vadd.s32 40, %v1675_v2  ;;  %v1723_v13 = vadd.s32 48, %v1675_v2  ;;  %v1726_v14 = vadd.s32 56, %v1675_v2 }
  0x2b   :  { %v1700_v9 = vrot.slane %v1696_v8, %v1682_v4  ;;  %v1735_v15 = vadd.s32 64, %v1675_v2  ;;  %v1738_v16 = vadd.s32 72, %v1675_v2  ;;  %v1747_v17 = vadd.s32 80, %v1675_v2 }
  0x2c   :  { %v1750_v18 = vadd.s32 88, %v1675_v2  ;;  %v1759_v19 = vadd.s32 96, %v1675_v2  ;;  %v1762_v20 = vadd.s32 104, %v1675_v2  ;;  %v1771_v21 = vadd.s32 112, %v1675_v2 }
  0x2d   :  { %vm66_vm1 = vcmp.eq.s32.totalorder %v1675_v2, %v1700_v9  ;;  %vm67_vm2 = vcmp.eq.s32.totalorder %v1685_v5, %v1700_v9  ;;  %vm68_vm3 = vcmp.eq.s32.totalorder %v1688_v6, %v1700_v9  ;;  %vm69_vm4 = vcmp.eq.s32.totalorder %v1691_v7, %v1700_v9 }
  0x2e   :  { %vm1383_vm5 = vmpackc.low %vm67_vm2, %vm66_vm1  ;;  %vm70_vm7 = vcmp.eq.s32.totalorder %v1703_v10, %v1700_v9  ;;  %vm71_vm8 = vcmp.eq.s32.totalorder %v1706_v11, %v1700_v9  ;;  %vm72_vm10 = vcmp.eq.s32.totalorder %v1723_v13, %v1700_v9  ;;  %vm73_vm11 = vcmp.eq.s32.totalorder %v1726_v14, %v1700_v9 }
  0x2f   :  { %1384 = vmatpush3.bf16.msk.msra.mxu0 %vm1383_vm5, %v1622_v12  ;;  %vm1386_vm6 = vmpackc.low %vm69_vm4, %vm68_vm3  ;;  %vm74_vm13 = vcmp.eq.s32.totalorder %v1735_v15, %v1700_v9  ;;  %vm75_vm14 = vcmp.eq.s32.totalorder %v1738_v16, %v1700_v9  ;;  %vm76_vm1 = vcmp.eq.s32.totalorder %v1747_v17, %v1700_v9  ;;  %vm77_vm2 = vcmp.eq.s32.totalorder %v1750_v18, %v1700_v9 }
  0x30   :  { %1385 = vmatprep.subr.bf16.mxu0 %v1619_v1  ;;  %vm1389_vm9 = vmpackc.low %vm71_vm8, %vm70_vm7  ;;  %vm78_vm4 = vcmp.eq.s32.totalorder %v1759_v19, %v1700_v9  ;;  %vm79_vm5 = vcmp.eq.s32.totalorder %v1762_v20, %v1700_v9  ;;  %v1774_v22 = vadd.s32 120, %v1675_v2  ;;  %vm80_vm7 = vcmp.eq.s32.totalorder %v1771_v21, %v1700_v9 }
  0x31   :  { %vm1392_vm12 = vmpackc.low %vm73_vm11, %vm72_vm10  ;;  %v326_v43 = vsub.s32 1, %v1675_v2 }
  0x32   :  { %vm1395_vm15 = vmpackc.low %vm75_vm14, %vm74_vm13  ;;  %vm81_vm8 = vcmp.eq.s32.totalorder %v1774_v22, %v1700_v9 }
  0x33   :  { %1387 = vmatpush3.bf16.msk.msra.mxu0 %vm1386_vm6, %v1622_v12  ;;  %vm1398_vm3 = vmpackc.low %vm77_vm2, %vm76_vm1 }
  0x34   :  { %1388 = vmatprep.subr.bf16.mxu0 %v1619_v1  ;;  %vm1401_vm6 = vmpackc.low %vm79_vm5, %vm78_vm4 }
  0x37   :  { %1390 = vmatpush3.bf16.msk.msra.mxu0 %vm1389_vm9, %v1622_v12  ;;  %vm1404_vm9 = vmpackc.low %vm81_vm8, %vm80_vm7 }
  0x38   :  { %1391 = vmatprep.subr.bf16.mxu0 %v1619_v1 }
  0x3b   :  { %1393 = vmatpush3.bf16.msk.msra.mxu0 %vm1392_vm12, %v1622_v12 }
  0x3c   :  { %1394 = vmatprep.subr.bf16.mxu0 %v1619_v1 }
  0x3f   :  { %1396 = vmatpush3.bf16.msk.msra.mxu0 %vm1395_vm15, %v1622_v12 }
  0x40   :  { %1397 = vmatprep.subr.bf16.mxu0 %v1619_v1 }
  0x43   :  { %1399 = vmatpush3.bf16.msk.msra.mxu0 %vm1398_vm3, %v1622_v12 }
  0x44   :  { %1400 = vmatprep.subr.bf16.mxu0 %v1619_v1 }
  0x47   :  { %1402 = vmatpush3.bf16.msk.msra.mxu0 %vm1401_vm6, %v1622_v12 }
  0x48   :  { %1403 = vmatprep.subr.bf16.mxu0 %v1619_v1 }
  0x4b   :  { %1405 = vmatpush3.bf16.msk.msra.mxu0 %vm1404_vm9, %v1622_v12 }
  0x4c   :  { %1430 = vmatprep.subr.bf16.mxu0 %v1619_v1 }
  0x4e   :  { %1205 = vmatmul.mubr.f32.vlgmr.msra.gmra.mrb[0].mxu0 %v1785_v23 }
  0x4f   :  { %1274 = vmatprep.mubr.msk.f32.mxu0 %vm1620_vm0, %v1621_v3 }
 0x121   :  { %v1791_v24 = vpop.f32.mrb[0].mxu0 }
 0x122   :  { %v186_v26 = vrot.slane %v1791_v24, 1  ;;  %v907_v27 = vadd.f32 -1.0, %v1791_v24  ;;  %v1206_v28 = vpop.f32.mrb[1].mxu0 }
 0x124   :  { %v188_v29 = vmul.f32 %v186_v26, %v184_v25  ;;  %v191_v30 = vmax.f32 %v907_v27, 0.0  ;;  %v708_v26 = vld [vmem:[%s2024_s3 + $0x2] sm:$0x1]  ;;  %s1623_s3 = smov [#allocation7]  }
 0x125   :  { %s865_s18 = sshll.u32 %s1623_s3, 4  ;;  %s866_s18 = int_to_ptr.vmem [resolvable:$true] %s865_s18 }
 0x126   :  { %v189_v31 = vfloor.f32 %v188_v29  ;;  %v193_v32 = vrot.slane %v191_v30, 1  ;;  %s1589_s19 = scalar_lea.vmem %s866_s18, 128  ;;  %p1594_p3 = scmp.lt.s32.totalorder %s866_s18, %s866_s18 }
 0x127   :  { %p1590_p2 = scmp.ne.s32.totalorder %s866_s18, %s1589_s19  ;;  %p1595_p4 = scmp.lt.s32.totalorder %s1589_s19, %s1589_s19 }
 0x128   :  { %v195_v33 = vmin.f32 %v189_v31, %v193_v32 }
 0x129   :  { %p1596_p5 = por %p1595_p4, %p1594_p3 }
 0x12a   :  { %v196_v34 = vadd.f32 %v195_v33, %v1791_v24 }
 0x12b   :  { %p1597_p6 = pnand %p1596_p5, %p1590_p2 }
 0x12c   :  { %v1526_v35 = vtrunc.f32 %v196_v34 }
 0x12e   :  { %v1527_v36 = vcvt.f32.s32 %v1526_v35 }
 0x130   :  { %v201_v37 = vrot.slane %v1527_v36, %v1682_v4 }
 0x132   :  { %vm202_vm10 = vcmp.eq.s32.totalorder %v1675_v2, %v201_v37  ;;  %vm203_vm11 = vcmp.eq.s32.totalorder %v1685_v5, %v201_v37  ;;  %vm204_vm13 = vcmp.eq.s32.totalorder %v1688_v6, %v201_v37  ;;  %vm205_vm14 = vcmp.eq.s32.totalorder %v1691_v7, %v201_v37 }
 0x133   :  { %vm1407_vm12 = vmpackc.low %vm203_vm11, %vm202_vm10  ;;  %vm206_vm1 = vcmp.eq.s32.totalorder %v1703_v10, %v201_v37  ;;  %vm207_vm2 = vcmp.eq.s32.totalorder %v1706_v11, %v201_v37  ;;  %vm208_vm4 = vcmp.eq.s32.totalorder %v1723_v13, %v201_v37  ;;  %vm209_vm5 = vcmp.eq.s32.totalorder %v1726_v14, %v201_v37 }
 0x134   :  { %1408 = vmatpush3.bf16.msk.msra.mxu1 %vm1407_vm12, %v1622_v12  ;;  %vm1410_vm15 = vmpackc.low %vm205_vm14, %vm204_vm13  ;;  %vm210_vm7 = vcmp.eq.s32.totalorder %v1735_v15, %v201_v37  ;;  %vm211_vm8 = vcmp.eq.s32.totalorder %v1738_v16, %v201_v37  ;;  %vm212_vm10 = vcmp.eq.s32.totalorder %v1747_v17, %v201_v37  ;;  %vm213_vm11 = vcmp.eq.s32.totalorder %v1750_v18, %v201_v37 }
 0x135   :  { %1409 = vmatprep.subr.bf16.mxu1 %v1619_v1  ;;  %vm1413_vm3 = vmpackc.low %vm207_vm2, %vm206_vm1  ;;  %vm214_vm13 = vcmp.eq.s32.totalorder %v1759_v19, %v201_v37  ;;  %vm215_vm14 = vcmp.eq.s32.totalorder %v1762_v20, %v201_v37  ;;  %vm216_vm1 = vcmp.eq.s32.totalorder %v1771_v21, %v201_v37  ;;  %vm217_vm2 = vcmp.eq.s32.totalorder %v1774_v22, %v201_v37 }
 0x136   :  { %vm1416_vm6 = vmpackc.low %vm209_vm5, %vm208_vm4  ;;  %vm321_vm4 = vcmp.gt.f32.partialorder %v1791_v24, 0.0 }
 0x137   :  { %vm1419_vm9 = vmpackc.low %vm211_vm8, %vm210_vm7 }
 0x138   :  { %1411 = vmatpush3.bf16.msk.msra.mxu1 %vm1410_vm15, %v1622_v12  ;;  %vm1422_vm12 = vmpackc.low %vm213_vm11, %vm212_vm10 }
 0x139   :  { %1412 = vmatprep.subr.bf16.mxu1 %v1619_v1  ;;  %vm1425_vm15 = vmpackc.low %vm215_vm14, %vm214_vm13 }
 0x13c   :  { %1414 = vmatpush3.bf16.msk.msra.mxu1 %vm1413_vm3, %v1622_v12  ;;  %vm1428_vm3 = vmpackc.low %vm217_vm2, %vm216_vm1 }
 0x13d   :  { %1415 = vmatprep.subr.bf16.mxu1 %v1619_v1 }
 0x140   :  { %1417 = vmatpush3.bf16.msk.msra.mxu1 %vm1416_vm6, %v1622_v12 }
 0x141   :  { %1418 = vmatprep.subr.bf16.mxu1 %v1619_v1 }
 0x144   :  { %1420 = vmatpush3.bf16.msk.msra.mxu1 %vm1419_vm9, %v1622_v12 }
 0x145   :  { %1421 = vmatprep.subr.bf16.mxu1 %v1619_v1 }
 0x148   :  { %1423 = vmatpush3.bf16.msk.msra.mxu1 %vm1422_vm12, %v1622_v12 }
 0x149   :  { %1424 = vmatprep.subr.bf16.mxu1 %v1619_v1 }
 0x14c   :  { %1426 = vmatpush3.bf16.msk.msra.mxu1 %vm1425_vm15, %v1622_v12 }
 0x14d   :  { %1427 = vmatprep.subr.bf16.mxu1 %v1619_v1 }
 0x150   :  { %1429 = vmatpush3.bf16.msk.msra.mxu1 %vm1428_vm3, %v1622_v12 }
 0x151   :  { %1454 = vmatprep.subr.bf16.mxu1 %v1619_v1 }
 0x153   :  { %1240 = vmatmul.mubr.f32.vlgmr.msra.gmra.mrb[0].mxu1 %v1831_v38 }
 0x154   :  { %1309 = vmatprep.mubr.msk.f32.mxu1 %vm1620_vm0, %v1621_v3 }
 0x226   :  { %v316_v39 = vpop.f32.mrb[0].mxu1 }
 0x227   :  { %v1528_v40 = vtrunc.f32 %v316_v39  ;;  %v1241_v41 = vpop.f32.mrb[1].mxu1 }
 0x229   :  { %v1529_v42 = vcvt.f32.s32 %v1528_v40 }
 0x22b   :  { %v322_v44 = vrot.slane %v1529_v42, 7 }
 0x22d   :  { %v1840_v45 = vsel %vm321_vm4, %v322_v44, %v1700_v9 }
 0x22e   :  { %v327_v46 = vrot.slane %v1840_v45, %v326_v43 }
 0x230   :  { %vm328_vm5 = vcmp.eq.s32.totalorder %v1675_v2, %v327_v46  ;;  %vm329_vm6 = vcmp.eq.s32.totalorder %v1685_v5, %v327_v46  ;;  %vm330_vm8 = vcmp.eq.s32.totalorder %v1688_v6, %v327_v46  ;;  %vm331_vm9 = vcmp.eq.s32.totalorder %v1691_v7, %v327_v46 }
 0x231   :  { %vm1431_vm7 = vmpackc.low %vm329_vm6, %vm328_vm5  ;;  %vm332_vm11 = vcmp.eq.s32.totalorder %v1703_v10, %v327_v46  ;;  %vm333_vm12 = vcmp.eq.s32.totalorder %v1706_v11, %v327_v46  ;;  %vm334_vm14 = vcmp.eq.s32.totalorder %v1723_v13, %v327_v46  ;;  %vm335_vm15 = vcmp.eq.s32.totalorder %v1726_v14, %v327_v46 }
 0x232   :  { %1432 = vmatpush3.bf16.msk.msra.mxu0 %vm1431_vm7, %v1622_v12  ;;  %vm1434_vm10 = vmpackc.low %vm331_vm9, %vm330_vm8  ;;  %vm336_vm2 = vcmp.eq.s32.totalorder %v1735_v15, %v327_v46  ;;  %vm337_vm3 = vcmp.eq.s32.totalorder %v1738_v16, %v327_v46  ;;  %vm338_vm5 = vcmp.eq.s32.totalorder %v1747_v17, %v327_v46  ;;  %vm339_vm6 = vcmp.eq.s32.totalorder %v1750_v18, %v327_v46 }
 0x233   :  { %1433 = vmatprep.subr.bf16.mxu0 %v1619_v1  ;;  %vm1437_vm13 = vmpackc.low %vm333_vm12, %vm332_vm11  ;;  %vm340_vm8 = vcmp.eq.s32.totalorder %v1759_v19, %v327_v46  ;;  %vm341_vm9 = vcmp.eq.s32.totalorder %v1762_v20, %v327_v46  ;;  %vm342_vm11 = vcmp.eq.s32.totalorder %v1771_v21, %v327_v46  ;;  %vm343_vm12 = vcmp.eq.s32.totalorder %v1774_v22, %v327_v46 }
 0x234   :  { %vm1440_vm1 = vmpackc.low %vm335_vm15, %vm334_vm14 }
 0x235   :  { %vm1443_vm4 = vmpackc.low %vm337_vm3, %vm336_vm2 }
 0x236   :  { %1435 = vmatpush3.bf16.msk.msra.mxu0 %vm1434_vm10, %v1622_v12  ;;  %vm1446_vm7 = vmpackc.low %vm339_vm6, %vm338_vm5 }
 0x237   :  { %1436 = vmatprep.subr.bf16.mxu0 %v1619_v1  ;;  %vm1449_vm10 = vmpackc.low %vm341_vm9, %vm340_vm8 }
 0x23a   :  { %1438 = vmatpush3.bf16.msk.msra.mxu0 %vm1437_vm13, %v1622_v12  ;;  %vm1452_vm13 = vmpackc.low %vm343_vm12, %vm342_vm11 }
 0x23b   :  { %1439 = vmatprep.subr.bf16.mxu0 %v1619_v1 }
 0x23e   :  { %1441 = vmatpush3.bf16.msk.msra.mxu0 %vm1440_vm1, %v1622_v12 }
 0x23f   :  { %1442 = vmatprep.subr.bf16.mxu0 %v1619_v1 }
 0x242   :  { %1444 = vmatpush3.bf16.msk.msra.mxu0 %vm1443_vm4, %v1622_v12 }
 0x243   :  { %1445 = vmatprep.subr.bf16.mxu0 %v1619_v1 }
 0x246   :  { %1447 = vmatpush3.bf16.msk.msra.mxu0 %vm1446_vm7, %v1622_v12 }
 0x247   :  { %1448 = vmatprep.subr.bf16.mxu0 %v1619_v1 }
 0x24a   :  { %1450 = vmatpush3.bf16.msk.msra.mxu0 %vm1449_vm10, %v1622_v12 }
 0x24b   :  { %1451 = vmatprep.subr.bf16.mxu0 %v1619_v1 }
 0x24e   :  { %1453 = vmatpush3.bf16.msk.msra.mxu0 %vm1452_vm13, %v1622_v12 }
 0x24f   :  { %1478 = vmatprep.subr.bf16.mxu0 %v1619_v1 }
 0x251   :  { %1275 = vmatmul.mubr.f32.vlgmr.msra.gmra.mrb[2].mxu0 %v1785_v23 }
 0x252   :  { %1344 = vmatprep.mubr.msk.f32.mxu0 %vm1620_vm0, %v1621_v3 }
 0x324   :  { %v1880_v47 = vpop.f32.mrb[2].mxu0 }
 0x325   :  { %v448_v49 = vrot.slane %v1880_v47, 1  ;;  %v972_v50 = vadd.f32 -1.0, %v1880_v47  ;;  %v1276_v51 = vpop.f32.mrb[3].mxu0 }
 0x327   :  { %v450_v52 = vmul.f32 %v448_v49, %v446_v48  ;;  %v453_v53 = vmax.f32 %v972_v50, 0.0 }
 0x329   :  { %v451_v54 = vfloor.f32 %v450_v52  ;;  %v455_v55 = vrot.slane %v453_v53, 1 }
 0x32b   :  { %v457_v56 = vmin.f32 %v451_v54, %v455_v55 }
 0x32d   :  { %v458_v57 = vadd.f32 %v457_v56, %v1880_v47 }
 0x32f   :  { %v1530_v58 = vtrunc.f32 %v458_v57 }
 0x331   :  { %v1531_v59 = vcvt.f32.s32 %v1530_v58 }
 0x333   :  { %v463_v60 = vrot.slane %v1531_v59, %v1682_v4 }
 0x335   :  { %vm464_vm14 = vcmp.eq.s32.totalorder %v1675_v2, %v463_v60  ;;  %vm465_vm15 = vcmp.eq.s32.totalorder %v1685_v5, %v463_v60  ;;  %vm466_vm2 = vcmp.eq.s32.totalorder %v1688_v6, %v463_v60  ;;  %vm467_vm3 = vcmp.eq.s32.totalorder %v1691_v7, %v463_v60 }
 0x336   :  { %vm1455_vm1 = vmpackc.low %vm465_vm15, %vm464_vm14  ;;  %vm468_vm5 = vcmp.eq.s32.totalorder %v1703_v10, %v463_v60  ;;  %vm469_vm6 = vcmp.eq.s32.totalorder %v1706_v11, %v463_v60  ;;  %vm470_vm8 = vcmp.eq.s32.totalorder %v1723_v13, %v463_v60  ;;  %vm471_vm9 = vcmp.eq.s32.totalorder %v1726_v14, %v463_v60 }
 0x337   :  { %1456 = vmatpush3.bf16.msk.msra.mxu1 %vm1455_vm1, %v1622_v12  ;;  %vm1458_vm4 = vmpackc.low %vm467_vm3, %vm466_vm2  ;;  %vm472_vm11 = vcmp.eq.s32.totalorder %v1735_v15, %v463_v60  ;;  %vm473_vm12 = vcmp.eq.s32.totalorder %v1738_v16, %v463_v60  ;;  %vm474_vm14 = vcmp.eq.s32.totalorder %v1747_v17, %v463_v60  ;;  %vm475_vm15 = vcmp.eq.s32.totalorder %v1750_v18, %v463_v60 }
 0x338   :  { %1457 = vmatprep.subr.bf16.mxu1 %v1619_v1  ;;  %vm1461_vm7 = vmpackc.low %vm469_vm6, %vm468_vm5  ;;  %vm476_vm2 = vcmp.eq.s32.totalorder %v1759_v19, %v463_v60  ;;  %vm477_vm3 = vcmp.eq.s32.totalorder %v1762_v20, %v463_v60  ;;  %vm478_vm5 = vcmp.eq.s32.totalorder %v1771_v21, %v463_v60  ;;  %vm479_vm6 = vcmp.eq.s32.totalorder %v1774_v22, %v463_v60 }
 0x339   :  { %vm1464_vm10 = vmpackc.low %vm471_vm9, %vm470_vm8  ;;  %vm583_vm8 = vcmp.gt.f32.partialorder %v1880_v47, 0.0 }
 0x33a   :  { %vm1467_vm13 = vmpackc.low %vm473_vm12, %vm472_vm11 }
 0x33b   :  { %1459 = vmatpush3.bf16.msk.msra.mxu1 %vm1458_vm4, %v1622_v12  ;;  %vm1470_vm1 = vmpackc.low %vm475_vm15, %vm474_vm14 }
 0x33c   :  { %1460 = vmatprep.subr.bf16.mxu1 %v1619_v1  ;;  %vm1473_vm4 = vmpackc.low %vm477_vm3, %vm476_vm2 }
 0x33f   :  { %1462 = vmatpush3.bf16.msk.msra.mxu1 %vm1461_vm7, %v1622_v12  ;;  %vm1476_vm7 = vmpackc.low %vm479_vm6, %vm478_vm5 }
 0x340   :  { %1463 = vmatprep.subr.bf16.mxu1 %v1619_v1 }
 0x343   :  { %1465 = vmatpush3.bf16.msk.msra.mxu1 %vm1464_vm10, %v1622_v12 }
 0x344   :  { %1466 = vmatprep.subr.bf16.mxu1 %v1619_v1 }
 0x347   :  { %1468 = vmatpush3.bf16.msk.msra.mxu1 %vm1467_vm13, %v1622_v12 }
 0x348   :  { %1469 = vmatprep.subr.bf16.mxu1 %v1619_v1 }
 0x34b   :  { %1471 = vmatpush3.bf16.msk.msra.mxu1 %vm1470_vm1, %v1622_v12 }
 0x34c   :  { %1472 = vmatprep.subr.bf16.mxu1 %v1619_v1 }
 0x34f   :  { %1474 = vmatpush3.bf16.msk.msra.mxu1 %vm1473_vm4, %v1622_v12 }
 0x350   :  { %1475 = vmatprep.subr.bf16.mxu1 %v1619_v1 }
 0x353   :  { %1477 = vmatpush3.bf16.msk.msra.mxu1 %vm1476_vm7, %v1622_v12 }
 0x354   :  { %1502 = vmatprep.subr.bf16.mxu1 %v1619_v1 }
 0x356   :  { %1310 = vmatmul.mubr.f32.vlgmr.msra.gmra.mrb[2].mxu1 %v1831_v38 }
 0x357   :  { %1379 = vmatprep.mubr.msk.f32.mxu1 %vm1620_vm0, %v1621_v3 }
 0x429   :  { %v578_v61 = vpop.f32.mrb[2].mxu1 }
 0x42a   :  { %v1532_v62 = vtrunc.f32 %v578_v61  ;;  %v1311_v63 = vpop.f32.mrb[3].mxu1 }
 0x42c   :  { %v1533_v0 = vcvt.f32.s32 %v1532_v62 }
 0x42e   :  { %v584_v9 = vrot.slane %v1533_v0, 7 }
 0x430   :  { %v1926_v24 = vsel %vm583_vm8, %v584_v9, %v1840_v45 }
 0x431   :  { %v589_v25 = vrot.slane %v1926_v24, %v326_v43 }
 0x433   :  { %vm590_vm9 = vcmp.eq.s32.totalorder %v1675_v2, %v589_v25  ;;  %vm591_vm10 = vcmp.eq.s32.totalorder %v1685_v5, %v589_v25  ;;  %vm592_vm0 = vcmp.eq.s32.totalorder %v1688_v6, %v589_v25  ;;  %vm593_vm12 = vcmp.eq.s32.totalorder %v1691_v7, %v589_v25 }
 0x434   :  { %vm1479_vm11 = vmpackc.low %vm591_vm10, %vm590_vm9  ;;  %vm594_vm14 = vcmp.eq.s32.totalorder %v1703_v10, %v589_v25  ;;  %vm595_vm15 = vcmp.eq.s32.totalorder %v1706_v11, %v589_v25  ;;  %vm596_vm2 = vcmp.eq.s32.totalorder %v1723_v13, %v589_v25  ;;  %vm597_vm3 = vcmp.eq.s32.totalorder %v1726_v14, %v589_v25 }
 0x435   :  { %1480 = vmatpush3.bf16.msk.msra.mxu0 %vm1479_vm11, %v1622_v12  ;;  %vm1482_vm13 = vmpackc.low %vm593_vm12, %vm592_vm0  ;;  %vm598_vm5 = vcmp.eq.s32.totalorder %v1735_v15, %v589_v25  ;;  %vm599_vm6 = vcmp.eq.s32.totalorder %v1738_v16, %v589_v25  ;;  %vm600_vm8 = vcmp.eq.s32.totalorder %v1747_v17, %v589_v25  ;;  %vm601_vm9 = vcmp.eq.s32.totalorder %v1750_v18, %v589_v25 }
 0x436   :  { %1481 = vmatprep.subr.bf16.mxu0 %v1619_v1  ;;  %vm1485_vm1 = vmpackc.low %vm595_vm15, %vm594_vm14  ;;  %vm602_vm11 = vcmp.eq.s32.totalorder %v1759_v19, %v589_v25  ;;  %vm603_vm0 = vcmp.eq.s32.totalorder %v1762_v20, %v589_v25  ;;  %vm605_vm14 = vcmp.eq.s32.totalorder %v1774_v22, %v589_v25 }
 0x437   :  { %vm1488_vm4 = vmpackc.low %vm597_vm3, %vm596_vm2 }
 0x438   :  { %vm1491_vm7 = vmpackc.low %vm599_vm6, %vm598_vm5 }
 0x439   :  { %1483 = vmatpush3.bf16.msk.msra.mxu0 %vm1482_vm13, %v1622_v12  ;;  %vm1494_vm10 = vmpackc.low %vm601_vm9, %vm600_vm8  ;;  %vm604_vm13 = vcmp.eq.s32.totalorder %v1771_v21, %v589_v25 }
 0x43a   :  { %1484 = vmatprep.subr.bf16.mxu0 %v1619_v1  ;;  %vm1497_vm12 = vmpackc.low %vm603_vm0, %vm602_vm11 }
 0x43b   :  { %vm1500_vm15 = vmpackc.low %vm605_vm14, %vm604_vm13 }
 0x43d   :  { %1486 = vmatpush3.bf16.msk.msra.mxu0 %vm1485_vm1, %v1622_v12 }
 0x43e   :  { %1487 = vmatprep.subr.bf16.mxu0 %v1619_v1 }
 0x441   :  { %1489 = vmatpush3.bf16.msk.msra.mxu0 %vm1488_vm4, %v1622_v12 }
 0x442   :  { %1490 = vmatprep.subr.bf16.mxu0 %v1619_v1 }
 0x445   :  { %1492 = vmatpush3.bf16.msk.msra.mxu0 %vm1491_vm7, %v1622_v12 }
 0x446   :  { %1493 = vmatprep.subr.bf16.mxu0 %v1619_v1 }
 0x449   :  { %1495 = vmatpush3.bf16.msk.msra.mxu0 %vm1494_vm10, %v1622_v12 }
 0x44a   :  { %1496 = vmatprep.subr.bf16.mxu0 %v1619_v1 }
 0x44d   :  { %1498 = vmatpush3.bf16.msk.msra.mxu0 %vm1497_vm12, %v1622_v12 }
 0x44e   :  { %1499 = vmatprep.subr.bf16.mxu0 %v1619_v1 }
 0x451   :  { %1501 = vmatpush3.bf16.msk.msra.mxu0 %vm1500_vm15, %v1622_v12 }
 0x454   :  { %1345 = vmatmul.mubr.f32.vlgmr.msra.gmra.mrb[4].mxu0 %v1785_v23 }
 0x527   :  { %v1963_v3 = vpop.f32.mrb[4].mxu0 }
 0x528   :  { %v710_v27 = vrot.slane %v1963_v3, 1  ;;  %v1037_v28 = vadd.f32 -1.0, %v1963_v3  ;;  %v1346_v29 = vpop.f32.mrb[5].mxu0 }
 0x52a   :  { %v712_v30 = vmul.f32 %v710_v27, %v708_v26  ;;  %v715_v31 = vmax.f32 %v1037_v28, 0.0 }
 0x52c   :  { %v713_v32 = vfloor.f32 %v712_v30  ;;  %v717_v33 = vrot.slane %v715_v31, 1 }
 0x52e   :  { %v719_v34 = vmin.f32 %v713_v32, %v717_v33 }
 0x530   :  { %v720_v35 = vadd.f32 %v719_v34, %v1963_v3 }
 0x532   :  { %v1534_v36 = vtrunc.f32 %v720_v35 }
 0x534   :  { %v1535_v23 = vcvt.f32.s32 %v1534_v36 }
 0x536   :  { %v725_v37 = vrot.slane %v1535_v23, %v1682_v4 }
 0x538   :  { %vm726_vm1 = vcmp.eq.s32.totalorder %v1675_v2, %v725_v37  ;;  %vm727_vm2 = vcmp.eq.s32.totalorder %v1685_v5, %v725_v37  ;;  %vm728_vm4 = vcmp.eq.s32.totalorder %v1688_v6, %v725_v37  ;;  %vm729_vm5 = vcmp.eq.s32.totalorder %v1691_v7, %v725_v37 }
 0x539   :  { %vm1503_vm3 = vmpackc.low %vm727_vm2, %vm726_vm1  ;;  %vm730_vm7 = vcmp.eq.s32.totalorder %v1703_v10, %v725_v37  ;;  %vm731_vm8 = vcmp.eq.s32.totalorder %v1706_v11, %v725_v37  ;;  %vm732_vm10 = vcmp.eq.s32.totalorder %v1723_v13, %v725_v37  ;;  %vm733_vm11 = vcmp.eq.s32.totalorder %v1726_v14, %v725_v37 }
 0x53a   :  { %1504 = vmatpush3.bf16.msk.msra.mxu1 %vm1503_vm3, %v1622_v12  ;;  %vm1506_vm6 = vmpackc.low %vm729_vm5, %vm728_vm4  ;;  %vm734_vm12 = vcmp.eq.s32.totalorder %v1735_v15, %v725_v37  ;;  %vm735_vm13 = vcmp.eq.s32.totalorder %v1738_v16, %v725_v37  ;;  %vm736_vm15 = vcmp.eq.s32.totalorder %v1747_v17, %v725_v37  ;;  %vm737_vm1 = vcmp.eq.s32.totalorder %v1750_v18, %v725_v37 }
 0x53b   :  { %1505 = vmatprep.subr.bf16.mxu1 %v1619_v1  ;;  %vm1509_vm9 = vmpackc.low %vm731_vm8, %vm730_vm7  ;;  %vm738_vm3 = vcmp.eq.s32.totalorder %v1759_v19, %v725_v37  ;;  %vm739_vm4 = vcmp.eq.s32.totalorder %v1762_v20, %v725_v37  ;;  %vm741_vm7 = vcmp.eq.s32.totalorder %v1774_v22, %v725_v37  ;;  %v848_v7 = vrot.slane %v1926_v24, 7 }
 0x53c   :  { %vm1512_vm0 = vmpackc.low %vm733_vm11, %vm732_vm10  ;;  %vm845_vm10 = vcmp.gt.f32.partialorder %v1963_v3, 0.0  ;;  %vm852_vm11 = vcmask 1041408  }
 0x53d   :  { %vm1515_vm14 = vmpackc.low %vm735_vm13, %vm734_vm12  ;;  %vm856_vm12 = vcmask 1043456  }
 0x53e   :  { %1507 = vmatpush3.bf16.msk.msra.mxu1 %vm1506_vm6, %v1622_v12  ;;  %vm1518_vm2 = vmpackc.low %vm737_vm1, %vm736_vm15  ;;  %vm740_vm6 = vcmp.eq.s32.totalorder %v1771_v21, %v725_v37 }
 0x53f   :  { %1508 = vmatprep.subr.bf16.mxu1 %v1619_v1  ;;  %vm1521_vm5 = vmpackc.low %vm739_vm4, %vm738_vm3 }
 0x540   :  { %vm1524_vm8 = vmpackc.low %vm741_vm7, %vm740_vm6 }
 0x542   :  { %1510 = vmatpush3.bf16.msk.msra.mxu1 %vm1509_vm9, %v1622_v12  ;;  %vm850_vm9 = vcmask 1040384  }
 0x543   :  { %1511 = vmatprep.subr.bf16.mxu1 %v1619_v1 }
 0x546   :  { %1513 = vmatpush3.bf16.msk.msra.mxu1 %vm1512_vm0, %v1622_v12  ;;  %vm854_vm0 = vcmask 1042432  }
 0x547   :  { %1514 = vmatprep.subr.bf16.mxu1 %v1619_v1 }
 0x54a   :  { %1516 = vmatpush3.bf16.msk.msra.mxu1 %vm1515_vm14, %v1622_v12 }
 0x54b   :  { %1517 = vmatprep.subr.bf16.mxu1 %v1619_v1 }
 0x54e   :  { %1519 = vmatpush3.bf16.msk.msra.mxu1 %vm1518_vm2, %v1622_v12 }
 0x54f   :  { %1520 = vmatprep.subr.bf16.mxu1 %v1619_v1 }
 0x552   :  { %1522 = vmatpush3.bf16.msk.msra.mxu1 %vm1521_vm5, %v1622_v12 }
 0x553   :  { %1523 = vmatprep.subr.bf16.mxu1 %v1619_v1 }
 0x556   :  { %1525 = vmatpush3.bf16.msk.msra.mxu1 %vm1524_vm8, %v1622_v12  ;;  %v851_v12 = vsel %vm850_vm9, %v1696_v8, %v1840_v45 }
 0x557   :  { %v853_v13 = vsel %vm852_vm11, %v851_v12, %v848_v7 }
 0x559   :  { %1380 = vmatmul.mubr.f32.vlgmr.msra.gmra.mrb[4].mxu1 %v1831_v38 }
 0x62c   :  { %v840_v2 = vpop.f32.mrb[4].mxu1 }
 0x62d   :  { %v1536_v4 = vtrunc.f32 %v840_v2  ;;  %v1381_v5 = vpop.f32.mrb[5].mxu1 }
 0x62f   :  { %v1537_v6 = vcvt.f32.s32 %v1536_v4 }
 0x631   :  { %v846_v10 = vrot.slane %v1537_v6, 7 }
 0x633   :  { %v847_v11 = vsel %vm845_vm10, %v846_v10, %v1926_v24 }
 0x634   :  { %v849_v1 = vrot.slane %v847_v11, 6 }
 0x636   :  { %v855_v14 = vsel %vm854_vm0, %v853_v13, %v849_v1 }
 0x637   :  { %v857_v15 = vsel %vm856_vm12, %v855_v14, 0 }
 0x638   :  { %858 = vst [vmem:[#allocation7] sm:$0xff] %v857_v15 }
 0x639   :  { %1600 = shalt.err (!%p1597_p6)
}
 0x63a   :  { %s1601_s22 = scalar_lea.hbm %s2025_s4, 128 }
 0x63b   :  { %p1602_p7 = scmp.ne.s32.totalorder %s2025_s4, %s1601_s22  ;;  %p1605_p8 = scmp.lt.u32.totalorder %s1601_s22, %s2025_s4 }
 0x63d   :  { %p1607_p9 = pnand %p1605_p8, %p1602_p7 }
 0x63f   :  { %1610 = shalt.err (!%p1607_p9)
}
 0x640   :  { %868 = dma.vmem_to_hbm [thread:$0]  %s866_s18, 128, %s2025_s4, [#allocation4]  }
 0x641   :  { %1615 = dma.done.wait [#allocation4], 128  }
 0x642   :  { %1616 = vsyncadd [#allocation4], 4294967168 }
 0x643   :  { %872 = vsyncpa [#allocation3], 1 }
 0x644   :  { %873 = vsyncpa [#allocation6], 1 }
 0x645   :  { %874 = vsyncpa [#allocation4], 1 }

</bundles_post_ra>
